<compile_context>
chip_gen: v7x
topology: tpu7x:2x2x1
jax: 0.10.0
libtpu: 0.0.40
codegen_flags: <defaults>
</compile_context>

<pallas_src>
import functools

import numpy as np
import jax
import jax.numpy as jnp
from jax import lax
from jax.experimental import pallas as pl
from jax.experimental.pallas import tpu as pltpu


def _cosine_embedding_loss_kernel(x1_ref, x2_ref, out_ref, *, inv_n, eps):
    """x1_ref / x2_ref: (C, Npad), sample i in lane i, zero-padded lanes beyond
    the real samples.  out_ref: (1, 1) float32 = mean_i max(0, cos_sim_i)."""
    x1 = x1_ref[...].astype(jnp.float32)                       # (C, Npad)
    x2 = x2_ref[...].astype(jnp.float32)

    # Single traversal: products computed together so the x1/x2 loads are
    # shared across the three sublane reductions.
    dot = jnp.sum(x1 * x2, axis=0, keepdims=True)              # (1, Npad)
    s1 = jnp.sum(x1 * x1, axis=0, keepdims=True)               # (1, Npad)
    s2 = jnp.sum(x2 * x2, axis=0, keepdims=True)               # (1, Npad)

    # PyTorch cosine_similarity clamps the product of norms:
    #   cos = dot / max(||x1||*||x2||, eps) = dot * rsqrt(max(s1*s2, eps^2))
    cos = dot * lax.rsqrt(jnp.maximum(s1 * s2, eps * eps))

    # y == -1 for every pair, margin == 0  ->  per-pair loss = max(0, cos).
    # Padded lanes are exactly zero -> dot = 0 -> cos = 0 -> contribute 0;
    # no lane mask needed.
    per_pair = jnp.maximum(cos, 0.0)

    out_ref[...] = jnp.sum(per_pair, axis=1, keepdims=True) * inv_n


def cosine_embedding_loss_all_negative(x1t, x2t, n_valid, eps=1e-8):
    """x1t, x2t: (C, n) lane-dense sampled frames (sample i in column i).
    Returns mean_i max(0, cos_sim(x1[:, i], x2[:, i])) over the n_valid pairs."""
    c, n = x1t.shape
    n_pad = max(128, ((n + 127) // 128) * 128)                 # lane-pad samples
    if n_pad != n:
        x1t = jnp.pad(x1t, ((0, 0), (0, n_pad - n)))           # zero lanes
        x2t = jnp.pad(x2t, ((0, 0), (0, n_pad - n)))

    kernel = functools.partial(
        _cosine_embedding_loss_kernel,
        inv_n=1.0 / float(n_valid), eps=float(eps))

    elem_bytes = jnp.dtype(x1t.dtype).itemsize
    cost = pl.CostEstimate(
        flops=8 * c * n_pad,                 # 3 muls + 3 reduce-adds + epilogue
        transcendentals=n_pad,               # one rsqrt per lane
        bytes_accessed=2 * c * n_pad * elem_bytes + 4)

    out = pl.pallas_call(
        kernel,
        out_shape=jax.ShapeDtypeStruct((1, 1), jnp.float32),
        in_specs=[
            pl.BlockSpec(memory_space=pltpu.MemorySpace.VMEM),
            pl.BlockSpec(memory_space=pltpu.MemorySpace.VMEM),
        ],
        out_specs=pl.BlockSpec(memory_space=pltpu.MemorySpace.VMEM),
        cost_estimate=cost,
    )(x1t, x2t)
    return out[0, 0]


def _sample_frame_pairs_lane_dense(seq, key, num_samples=200):
    """seq: (b, c, t) -> two (c, n) lane-dense sets of randomly sampled frames.

    Gathers straight from the native (b, c, t) layout (flattened, which is a
    free reshape) — no full-sequence transpose / HBM round trip."""
    b, c, t = seq.shape
    m = b * t
    n = min(num_samples, m)                                    # matches randperm[:200]
    k1, k2 = jax.random.split(key)
    idx1 = jax.random.permutation(k1, m)[:n]
    idx2 = jax.random.permutation(k2, m)[:n]

    flat = seq.reshape(-1)                                     # (b*c*t,), no copy
    ch = jnp.arange(c, dtype=jnp.int32)[:, None]               # (c, 1)

    def gather_cols(idx):
        idx = idx.astype(jnp.int32)
        b_idx = idx // t
        t_idx = idx % t
        flat_idx = (b_idx * (c * t))[None, :] + ch * t + t_idx[None, :]  # (c, n)
        return jnp.take(flat, flat_idx, axis=0)                # (c, n), lane-dense

    return gather_cols(idx1), gather_cols(idx2), n


def framewise_loss(seq, key, num_samples=200, eps=1e-8):
    """Pallas-backed equivalent of FramewiseLoss.forward.

    seq: (b, c, t) float array.  `key` replaces torch's global RNG for the
    random frame sampling.  Returns a scalar float32 loss."""
    x1t, x2t, n = _sample_frame_pairs_lane_dense(seq, key, num_samples)
    return cosine_embedding_loss_all_negative(x1t, x2t, n, eps)


# ---------------- pure-numpy reference (for correctness check) ---------------
def _framewise_loss_ref(x1t, x2t, eps=1e-8):
    """x1t, x2t: (C, n) lane-dense sampled frames (same layout as the kernel)."""
    x1 = np.asarray(x1t, np.float64)
    x2 = np.asarray(x2t, np.float64)
    dot = np.sum(x1 * x2, axis=0)
    denom = np.maximum(
        np.sqrt(np.sum(x1 * x1, axis=0) * np.sum(x2 * x2, axis=0)), eps)
    cos = dot / denom
    return np.float32(np.mean(np.maximum(cos, 0.0)))           # y = -1, margin = 0


if __name__ == "__main__":
    b, c, t = 2, 32, 128                    # seq: (batch, channels, time); b*t = 256 frames
    key = jax.random.PRNGKey(0)
    k_data, k_sample = jax.random.split(key)
    seq = jax.random.normal(k_data, (b, c, t), jnp.float32)

    loss = framewise_loss(seq, k_sample, num_samples=200)
    loss = jax.block_until_ready(loss)

    # same key -> identical sampled pairs for the reference
    x1t, x2t, _ = _sample_frame_pairs_lane_dense(seq, k_sample, num_samples=200)
    ref = _framewise_loss_ref(np.asarray(x1t), np.asarray(x2t))
    np.testing.assert_allclose(np.asarray(loss), ref, rtol=1e-4, atol=1e-5)

    print("KERNEL_OK")
</pallas_src>

<mosaic_0001>
module attributes {stable_mosaic.version = 11 : i64} {
  func.func @_cosine_embedding_loss_kernel(%arg0: memref<32x256xf32, #tpu.memory_space<vmem>>, %arg1: memref<32x256xf32, #tpu.memory_space<vmem>>, %arg2: memref<1x1xf32, #tpu.memory_space<vmem>>) attributes {dimension_semantics = [], scalar_prefetch = 0 : i64, scratch_operands = 0 : i64, tpu.core_type = #tpu.core_type<tc>} {
    %c0 = arith.constant 0 : index
    %c0_0 = arith.constant 0 : index
    %0 = vector.load %arg0[%c0, %c0_0] : memref<32x256xf32, #tpu.memory_space<vmem>>, vector<32x256xf32>
    %c0_1 = arith.constant 0 : index
    %c0_2 = arith.constant 0 : index
    %1 = vector.load %arg1[%c0_1, %c0_2] : memref<32x256xf32, #tpu.memory_space<vmem>>, vector<32x256xf32>
    %2 = arith.mulf %0, %1 : vector<32x256xf32>
    %cst = arith.constant dense<0.000000e+00> : vector<256xf32>
    %3 = vector.multi_reduction <add>, %2, %cst [0] : vector<32x256xf32> to vector<256xf32>
    %4 = vector.shape_cast %3 : vector<256xf32> to vector<1x256xf32>
    %5 = arith.mulf %0, %0 : vector<32x256xf32>
    %cst_3 = arith.constant dense<0.000000e+00> : vector<256xf32>
    %6 = vector.multi_reduction <add>, %5, %cst_3 [0] : vector<32x256xf32> to vector<256xf32>
    %7 = vector.shape_cast %6 : vector<256xf32> to vector<1x256xf32>
    %8 = arith.mulf %1, %1 : vector<32x256xf32>
    %cst_4 = arith.constant dense<0.000000e+00> : vector<256xf32>
    %9 = vector.multi_reduction <add>, %8, %cst_4 [0] : vector<32x256xf32> to vector<256xf32>
    %10 = vector.shape_cast %9 : vector<256xf32> to vector<1x256xf32>
    %11 = arith.mulf %7, %10 : vector<1x256xf32>
    %cst_5 = arith.constant 1.000000e-16 : f32
    %12 = vector.broadcast %cst_5 : f32 to vector<1x256xf32>
    %13 = arith.maximumf %11, %12 : vector<1x256xf32>
    %14 = math.rsqrt %13 : vector<1x256xf32>
    %15 = arith.mulf %4, %14 : vector<1x256xf32>
    %cst_6 = arith.constant 0.000000e+00 : f32
    %16 = vector.broadcast %cst_6 : f32 to vector<1x256xf32>
    %17 = arith.maximumf %15, %16 : vector<1x256xf32>
    %cst_7 = arith.constant dense<0.000000e+00> : vector<1xf32>
    %18 = vector.multi_reduction <add>, %17, %cst_7 [1] : vector<1x256xf32> to vector<1xf32>
    %19 = vector.shape_cast %18 : vector<1xf32> to vector<1x1xf32>
    %cst_8 = arith.constant 5.000000e-03 : f32
    %20 = vector.broadcast %cst_8 : f32 to vector<1x1xf32>
    %21 = arith.mulf %19, %20 : vector<1x1xf32>
    %c0_9 = arith.constant 0 : index
    %c0_10 = arith.constant 0 : index
    %22 = vector.load %arg2[%c0_9, %c0_10] : memref<1x1xf32, #tpu.memory_space<vmem>>, vector<1x1xf32>
    tpu.vector_store %arg2[%c0_9, %c0_10], %21 {strides = array<i32>} : memref<1x1xf32, #tpu.memory_space<vmem>>, vector<1x1xf32>,
    return
  }
}

</mosaic_0001>

<bundles_post_ra>
// kernel: tpu_custom_call.1
= control target key start
LH: loop header
LB: loop body
LE: loop exit
PB: predicated region body
PF: predicated region fallthrough
CT: control target
= control target key end

     0   :  { %7 = vsyncpa [#allocation3], 0  ;;  %s303_s0 = inlined_call_operand.hbm [shape: f32[32,256], index: 0, kind: input, shape index: {}]   ;;  %s304_s1 = inlined_call_operand.hbm [shape: f32[32,256], index: 1, kind: input, shape index: {}]   ;;  %s305_s2 = inlined_call_operand.hbm [shape: f32[1,1], index: 2, kind: output, shape index: {}]  }
   0x1   :  { %8 = vsyncpa [#allocation6], 0 }
   0x2   :  { %9 = vsyncpa [#allocation4], 0  ;;  %s247_s9 = smov [#allocation2]   ;;  %s175_s13 = scalar_lea.hbm %s303_s0, 1024 }
   0x3   :  { %s15_s10 = sshll.u32 %s247_s9, 4  ;;  %p176_p0 = scmp.ne.s32.totalorder %s303_s0, %s175_s13  ;;  %s16_s10 = int_to_ptr.vmem [resolvable:$true] %s15_s10 }
   0x4   :  { %p179_p1 = scmp.lt.u32.totalorder %s175_s13, %s303_s0 }
   0x6   :  { %p181_p2 = pnand %p179_p1, %p176_p0 }
   0x8   :  { %184 = shalt.err (!%p181_p2)
}
   0x9   :  { %s185_s18 = scalar_lea.vmem %s16_s10, 1024  ;;  %p190_p4 = scmp.lt.s32.totalorder %s16_s10, %s16_s10 }
   0xa   :  { %p186_p3 = scmp.ne.s32.totalorder %s16_s10, %s185_s18  ;;  %p191_p5 = scmp.lt.s32.totalorder %s185_s18, %s185_s18 }
   0xc   :  { %p192_p6 = por %p191_p5, %p190_p4 }
   0xe   :  { %p193_p7 = pnand %p192_p6, %p186_p3 }
  0x10   :  { %196 = shalt.err (!%p193_p7)
}
  0x11   :  { %s248_s19 = smov 256   ;;  %s249_s20 = smov 16  }
  0x12   :  { %21 = dma.hbm_to_vmem [thread:$0]  %s303_s0, 1024, %s16_s10, [#allocation3], %s248_s19, %s248_s19, %s249_s20  }
  0x13   :  { %s250_s23 = smov [#allocation5]   ;;  %s197_s27 = scalar_lea.hbm %s304_s1, 1024 }
  0x14   :  { %s27_s24 = sshll.u32 %s250_s23, 4  ;;  %p198_p8 = scmp.ne.s32.totalorder %s304_s1, %s197_s27  ;;  %s28_s24 = int_to_ptr.vmem [resolvable:$true] %s27_s24 }
  0x15   :  { %p201_p9 = scmp.lt.u32.totalorder %s197_s27, %s304_s1 }
  0x17   :  { %p203_p10 = pnand %p201_p9, %p198_p8 }
  0x19   :  { %206 = shalt.err (!%p203_p10)
}
  0x1a   :  { %s207_s4 = scalar_lea.vmem %s28_s24, 1024  ;;  %p212_p12 = scmp.lt.s32.totalorder %s28_s24, %s28_s24 }
  0x1b   :  { %p208_p11 = scmp.ne.s32.totalorder %s28_s24, %s207_s4  ;;  %p213_p13 = scmp.lt.s32.totalorder %s207_s4, %s207_s4 }
  0x1d   :  { %p214_p0 = por %p213_p13, %p212_p12 }
  0x1f   :  { %p215_p1 = pnand %p214_p0, %p208_p11 }
  0x21   :  { %218 = shalt.err (!%p215_p1)
}
  0x22   :  { %33 = dma.hbm_to_vmem [thread:$0]  %s304_s1, 1024, %s28_s24, [#allocation6], %s248_s19, %s248_s19, %s249_s20  }
  0x23   :  { %241 = dma.done.wait [#allocation3], 1024  }
  0x24   :  { %242 = vsyncadd [#allocation3], 4294966272 }
  0x25   :  { %243 = dma.done.wait [#allocation6], 1024  }
  0x26   :  { %244 = vsyncadd [#allocation6], 4294966272  ;;  %v40_v0 = vld [vmem:[#allocation2] sm:$0xff]  ;;  %v41_v1 = vld [vmem:[#allocation2 + $0x8] sm:$0xff]  ;;  %s251_s1 = smov [#allocation7]   ;;  %vm148_vm0 = vcmask 0  }
  0x27   :  { %v42_v2 = vld [vmem:[#allocation2 + $0x10] sm:$0xff]  ;;  %v43_v3 = vld [vmem:[#allocation2 + $0x18] sm:$0xff]  ;;  %v44_v4 = vld [vmem:[#allocation2 + $0x20] sm:$0xff]  ;;  %v82_v6 = vmul.f32 %v40_v0, %v40_v0  ;;  %v83_v7 = vmul.f32 %v41_v1, %v41_v1  ;;  %s156_s6 = sshll.u32 %s251_s1, 4  ;;  %s157_s6 = int_to_ptr.vmem [resolvable:$true] %s156_s6 }
  0x28   :  { %v45_v5 = vld [vmem:[#allocation2 + $0x28] sm:$0xff]  ;;  %v84_v8 = vmul.f32 %v42_v2, %v42_v2  ;;  %v46_v9 = vld [vmem:[#allocation2 + $0x30] sm:$0xff]  ;;  %v47_v10 = vld [vmem:[#allocation2 + $0x38] sm:$0xff]  ;;  %v85_v12 = vmul.f32 %v43_v3, %v43_v3  ;;  %v86_v13 = vmul.f32 %v44_v4, %v44_v4  ;;  %s219_s7 = scalar_lea.vmem %s157_s6, 16  ;;  %s223_s8 = scalar_lea.vmem %s157_s6, 32 }
  0x29   :  { %v48_v11 = vld [vmem:[#allocation5] sm:$0xff]  ;;  %v87_v14 = vmul.f32 %v45_v5, %v45_v5  ;;  %v49_v15 = vld [vmem:[#allocation5 + $0x8] sm:$0xff]  ;;  %v50_v16 = vld [vmem:[#allocation5 + $0x10] sm:$0xff]  ;;  %v88_v19 = vmul.f32 %v46_v9, %v46_v9  ;;  %v89_v20 = vmul.f32 %v47_v10, %v47_v10  ;;  %p220_p2 = scmp.ne.s32.totalorder %s157_s6, %s219_s7  ;;  %p224_p3 = scmp.lt.s32.totalorder %s157_s6, %s157_s6 }
  0x2a   :  { %v51_v17 = vld [vmem:[#allocation5 + $0x18] sm:$0xff]  ;;  %v56_v18 = vmul.f32 %v48_v11, %v40_v0  ;;  %v90_v21 = vadd.f32 %v84_v8, %v82_v6  ;;  %v57_v22 = vmul.f32 %v49_v15, %v41_v1  ;;  %v58_v23 = vmul.f32 %v50_v16, %v42_v2  ;;  %v52_v26 = vld [vmem:[#allocation5 + $0x20] sm:$0xff]  ;;  %v53_v27 = vld [vmem:[#allocation5 + $0x28] sm:$0xff]  ;;  %p225_p4 = scmp.lt.s32.totalorder %s223_s8, %s219_s7 }
  0x2b   :  { %v59_v24 = vmul.f32 %v51_v17, %v43_v3  ;;  %v99_v25 = vadd.f32 %v85_v12, %v83_v7  ;;  %v60_v29 = vmul.f32 %v52_v26, %v44_v4  ;;  %v61_v30 = vmul.f32 %v53_v27, %v45_v5  ;;  %v54_v32 = vld [vmem:[#allocation5 + $0x30] sm:$0xff]  ;;  %v55_v37 = vld [vmem:[#allocation5 + $0x38] sm:$0xff] }
  0x2c   :  { %v91_v28 = vadd.f32 %v90_v21, %v86_v13  ;;  %v108_v34 = vmul.f32 %v48_v11, %v48_v11  ;;  %v109_v35 = vmul.f32 %v49_v15, %v49_v15  ;;  %v110_v36 = vmul.f32 %v50_v16, %v50_v16  ;;  %p226_p5 = por %p225_p4, %p224_p3 }
  0x2d   :  { %v100_v31 = vadd.f32 %v99_v25, %v87_v14  ;;  %v64_v38 = vadd.f32 %v58_v23, %v56_v18  ;;  %v73_v39 = vadd.f32 %v59_v24, %v57_v22  ;;  %v111_v41 = vmul.f32 %v51_v17, %v51_v17 }
  0x2e   :  { %v92_v33 = vadd.f32 %v91_v28, %v88_v19  ;;  %v112_v43 = vmul.f32 %v52_v26, %v52_v26  ;;  %v113_v44 = vmul.f32 %v53_v27, %v53_v27  ;;  %v62_v45 = vmul.f32 %v54_v32, %v46_v9  ;;  %p227_p6 = pnand %p226_p5, %p220_p2 }
  0x2f   :  { %v101_v40 = vadd.f32 %v100_v31, %v89_v20  ;;  %v114_v47 = vmul.f32 %v54_v32, %v54_v32  ;;  %v115_v49 = vmul.f32 %v55_v37, %v55_v37  ;;  %v116_v50 = vadd.f32 %v110_v36, %v108_v34 }
  0x30   :  { %v93_v42 = vrot.slane %v92_v33, 4  ;;  %v125_v51 = vadd.f32 %v111_v41, %v109_v35  ;;  %v63_v52 = vmul.f32 %v55_v37, %v47_v10  ;;  %v65_v53 = vadd.f32 %v64_v38, %v60_v29 }
  0x31   :  { %v102_v46 = vrot.slane %v101_v40, 4  ;;  %v74_v54 = vadd.f32 %v73_v39, %v61_v30  ;;  %v117_v57 = vadd.f32 %v116_v50, %v112_v43 }
  0x32   :  { %v94_v48 = vadd.f32 %v93_v42, %v92_v33  ;;  %v126_v58 = vadd.f32 %v125_v51, %v113_v44  ;;  %v66_v62 = vadd.f32 %v65_v53, %v62_v45 }
  0x33   :  { %v103_v55 = vadd.f32 %v102_v46, %v101_v40  ;;  %v118_v60 = vadd.f32 %v117_v57, %v114_v47  ;;  %v75_v63 = vadd.f32 %v74_v54, %v63_v52 }
  0x34   :  { %v95_v56 = vrot.slane %v94_v48, 2  ;;  %v127_v61 = vadd.f32 %v126_v58, %v115_v49  ;;  %v67_v6 = vrot.slane %v66_v62, 4 }
  0x35   :  { %v104_v59 = vrot.slane %v103_v55, 2  ;;  %v119_v2 = vrot.slane %v118_v60, 4  ;;  %v76_v7 = vrot.slane %v75_v63, 4 }
  0x36   :  { %v96_v0 = vadd.f32 %v95_v56, %v94_v48  ;;  %v128_v3 = vrot.slane %v127_v61, 4  ;;  %v68_v14 = vadd.f32 %v67_v6, %v66_v62 }
  0x37   :  { %v105_v1 = vadd.f32 %v104_v59, %v103_v55  ;;  %v120_v4 = vadd.f32 %v119_v2, %v118_v60  ;;  %v77_v15 = vadd.f32 %v76_v7, %v75_v63 }
  0x38   :  { %v129_v5 = vadd.f32 %v128_v3, %v127_v61  ;;  %v97_v8 = vrot.slane %v96_v0, 1  ;;  %v69_v22 = vrot.slane %v68_v14, 2 }
  0x39   :  { %v106_v9 = vrot.slane %v105_v1, 1  ;;  %v121_v10 = vrot.slane %v120_v4, 2  ;;  %v78_v23 = vrot.slane %v77_v15, 2 }
  0x3a   :  { %v130_v11 = vrot.slane %v129_v5, 2  ;;  %v98_v16 = vadd.f32 %v97_v8, %v96_v0  ;;  %v70_v28 = vadd.f32 %v69_v22, %v68_v14 }
  0x3b   :  { %v122_v12 = vadd.f32 %v121_v10, %v120_v4  ;;  %v107_v17 = vadd.f32 %v106_v9, %v105_v1  ;;  %v79_v29 = vadd.f32 %v78_v23, %v77_v15 }
  0x3c   :  { %v131_v13 = vadd.f32 %v130_v11, %v129_v5  ;;  %v71_v30 = vrot.slane %v70_v28, 1 }
  0x3d   :  { %v123_v18 = vrot.slane %v122_v12, 1  ;;  %v80_v31 = vrot.slane %v79_v29, 1 }
  0x3e   :  { %v132_v19 = vrot.slane %v131_v13, 1  ;;  %v72_v32 = vadd.f32 %v71_v30, %v70_v28 }
  0x3f   :  { %v124_v20 = vadd.f32 %v123_v18, %v122_v12  ;;  %v81_v33 = vadd.f32 %v80_v31, %v79_v29 }
  0x40   :  { %v133_v21 = vadd.f32 %v132_v19, %v131_v13 }
  0x41   :  { %v134_v24 = vmul.f32 %v124_v20, %v98_v16 }
  0x42   :  { %v135_v25 = vmul.f32 %v133_v21, %v107_v17 }
  0x43   :  { %v136_v26 = vmax.f32 %v134_v24, 1e-16 }
  0x44   :  { %v137_v27 = vmax.f32 %v135_v25, 1e-16 }
  0x45   :  { %171 = vrsqrt.f32 %v136_v26 }
  0x46   :  { %173 = vrsqrt.f32 %v137_v27 }
  0x4f   :  { %v172_v34 = vpop.eup %171 }
  0x50   :  { %v174_v35 = vpop.eup %173  ;;  %v140_v36 = vmul.f32 %v172_v34, %v72_v32 }
  0x51   :  { %v141_v37 = vmul.f32 %v174_v35, %v81_v33 }
  0x52   :  { %v142_v38 = vmax.f32 %v140_v36, 0.0 }
  0x53   :  { %v143_v39 = vmax.f32 %v141_v37, 0.0 }
  0x55   :  { %v144_v40 = vadd.f32 %v143_v39, %v142_v38 }
  0x57   :  { %145 = vadd.xlane.f32.xlu0 %v144_v40 }
  0xe4   :  { %v146_v41 = vpop.xlane.xlu0 %145 }
  0xe5   :  { %v147_v42 = vmul.f32 0.005, %v146_v41 }
  0xe7   :  { %149 = vst.msk [vmem:[#allocation7] sm:$0x1] %vm148_vm0, %v147_v42 }
  0xe8   :  { %230 = shalt.err (!%p227_p6)
}
  0xe9   :  { %s231_s11 = scalar_lea.hbm %s305_s2, 16 }
  0xea   :  { %p232_p7 = scmp.ne.s32.totalorder %s305_s2, %s231_s11  ;;  %p235_p8 = scmp.lt.u32.totalorder %s231_s11, %s305_s2 }
  0xec   :  { %p237_p9 = pnand %p235_p8, %p232_p7 }
  0xee   :  { %240 = shalt.err (!%p237_p9)
}
  0xef   :  { %159 = dma.vmem_to_hbm [thread:$0]  %s157_s6, 16, %s305_s2, [#allocation4]  }
  0xf0   :  { %245 = dma.done.wait [#allocation4], 16  }
  0xf1   :  { %246 = vsyncadd [#allocation4], 4294967280 }
  0xf2   :  { %163 = vsyncpa [#allocation3], 1 }
  0xf3   :  { %164 = vsyncpa [#allocation6], 1 }
  0xf4   :  { %165 = vsyncpa [#allocation4], 1 }

</bundles_post_ra>
